<compile_context>
chip_gen: v7x
topology: tpu7x:2x2x1
jax: 0.10.0
libtpu: 0.0.40
codegen_flags: <defaults>
</compile_context>

<pallas_src>
import functools

import jax
import jax.numpy as jnp
from jax.experimental import pallas as pl
from jax.experimental.pallas import tpu as pltpu

LANE = 128     # TPU lane width
SUBLANE = 8    # f32 sublane tile


def _round_up(n, m):
    return ((n + m - 1) // m) * m


def candle_lstm_kernel(x2d_ref, wih_ref, whh_ref, b_ref, fcw_ref, fcb_ref, out_ref):
    """Full LSTM over T steps + last-step FC + sigmoid, single invocation.

    x2d_ref: (T*BP, D)       f32  time-major flattened inputs (row = t*BP + b)
    wih_ref: (D, 4*HR)       f32  W_ih^T, gates [i, f, g, o], gate-padded to HR
    whh_ref: (4*HR, 4*HR)    f32  W_hh^T, rows >= H zero, gate blocks padded
    b_ref:   (1, 4*HR)       f32  bias_ih + bias_hh, gate-padded (zeros in pad)
    fcw_ref: (4*HR, OP)      f32  fc.weight^T, rows >= H / cols >= O zero
    fcb_ref: (1, OP)         f32  fc.bias zero-padded
    out_ref: (BP, OP)        f32  sigmoid(fc(h_T)); real outputs in [:B, :O]
    """
    BP = out_ref.shape[0]
    T = x2d_ref.shape[0] // BP
    GW = whh_ref.shape[1]          # 4*HR, a multiple of 128 lanes
    HR = GW // 4

    # Hoisted input projection + bias: one matmul over all T*BP rows, entirely
    # off the serial recurrent dependency chain.
    xproj = (
        jnp.dot(x2d_ref[...], wih_ref[...], preferred_element_type=jnp.float32)
        + b_ref[...]
    )                                                   # (T*BP, GW)

    # (GW, GW) = 64 KiB for H=32 -> 16 vregs; safe to hoist above the unrolled
    # loop without spill pressure now that the gate dim is slim.
    whh = whh_ref[...]

    # h / c carried as plain vreg values (one lane-tile wide each); lanes >= H
    # hold bounded garbage that never reaches real outputs (whh/fcw rows >= H
    # are zero).
    h = jnp.zeros((BP, GW), jnp.float32)
    c = jnp.zeros((BP, GW), jnp.float32)

    # Roll shifts that bring each gate block onto lanes [0:HR] (np.roll
    # convention: out[j] = in[(j - shift) % GW]).
    r_f = GW - 1 * HR
    r_g = GW - 2 * HR
    r_o = GW - 3 * HR

    # Fully-unrolled static time loop; each step is one (BP, GW) x (GW, GW)
    # MXU push, two EUP tiles (sigmoid + tanh of gates), three XLU rolls, one
    # EUP tanh(c) and a handful of VPU mul/adds.
    for t in range(T):
        xp_t = xproj[t * BP:(t + 1) * BP, :]             # static, (8,128)-aligned
        gates = xp_t + jnp.dot(h, whh, preferred_element_type=jnp.float32)
        s_all = jax.nn.sigmoid(gates)                    # i | f | . | o blocks
        t_all = jnp.tanh(gates)                          # g block lives here
        f_ali = pltpu.roll(s_all, r_f, axis=1)           # f gate -> lanes [0:HR]
        g_ali = pltpu.roll(t_all, r_g, axis=1)           # g gate -> lanes [0:HR]
        o_ali = pltpu.roll(s_all, r_o, axis=1)           # o gate -> lanes [0:HR]
        c = f_ali * c + s_all * g_ali                    # lanes [0:H] exact
        h = o_ali * jnp.tanh(c)

    # Final FC on h_T, output padded to OP lanes -> lane-dense unmasked store.
    logits = (
        jnp.dot(h, fcw_ref[...], preferred_element_type=jnp.float32) + fcb_ref[...]
    )                                                    # (BP, OP)
    out_ref[...] = jax.nn.sigmoid(logits)


def prepare_params(params):
    """One-time weight padding / re-blocking (hoisted out of the forward path)."""
    H = params["w_hh_t"].shape[0]
    O = params["fc_w_t"].shape[1]
    HR = _round_up(H, LANE // 4)       # per-gate pad so 4*HR is a lane multiple
    GW = 4 * HR
    OP = _round_up(O, LANE)

    def pad_gates(w):
        # (..., 4*H) gate-blocked [i, f, g, o] -> (..., 4*HR), zeros per gate.
        parts = []
        for g in range(4):
            blk = w[..., g * H:(g + 1) * H]
            pad = jnp.zeros(w.shape[:-1] + (HR - H,), w.dtype)
            parts.append(jnp.concatenate([blk, pad], axis=-1))
        return jnp.concatenate(parts, axis=-1)

    wih_p = pad_gates(params["w_ih_t"]).astype(jnp.float32)               # (D, GW)
    whh_p = jnp.zeros((GW, GW), jnp.float32).at[:H].set(
        pad_gates(params["w_hh_t"]).astype(jnp.float32))                  # (GW, GW)
    b_p = pad_gates(params["bias"]).astype(jnp.float32)                   # (1, GW)
    fcw_p = jnp.zeros((GW, OP), jnp.float32).at[:H, :O].set(
        params["fc_w_t"].astype(jnp.float32))                             # (GW, OP)
    fcb_p = jnp.zeros((1, OP), jnp.float32).at[:, :O].set(
        params["fc_b"].astype(jnp.float32))                               # (1, OP)

    return {
        "emb_candle": params["emb_candle"],
        "emb_day": params["emb_day"],
        "wih_p": wih_p,
        "whh_p": whh_p,
        "b_p": b_p,
        "fcw_p": fcw_p,
        "fcb_p": fcb_p,
    }


@functools.partial(jax.jit, static_argnames=("out_dim",))
def candle_lstm_forward(x_candle, x_volume, x_day, prepared, *, out_dim):
    """Single-jit forward: embeddings + concat + layout glue + Pallas kernel."""
    emb_c = jnp.take(prepared["emb_candle"], x_candle, axis=0)       # (B, T, E)
    emb_d = jnp.take(prepared["emb_day"], x_day, axis=0)             # (B, T, Ed)
    x = jnp.concatenate(
        [emb_c, x_volume[..., None].astype(jnp.float32), emb_d], axis=-1
    ).astype(jnp.float32)                                            # (B, T, D)
    B, T, D = x.shape
    BP = _round_up(B, SUBLANE)
    OP = prepared["fcw_p"].shape[1]

    # Pad batch to fill f32 sublanes; padded rows compute harmless zeros/garbage
    # and are sliced away below.
    if BP != B:
        x = jnp.pad(x, ((0, BP - B), (0, 0), (0, 0)))

    # Time-major + flatten: row = t*BP + b.
    x2d = jnp.transpose(x, (1, 0, 2)).reshape(T * BP, D)

    vmem = pl.BlockSpec(memory_space=pltpu.MemorySpace.VMEM)
    out_padded = pl.pallas_call(
        candle_lstm_kernel,
        out_shape=jax.ShapeDtypeStruct((BP, OP), jnp.float32),
        in_specs=[vmem] * 6,
        out_specs=vmem,
    )(x2d, prepared["wih_p"], prepared["whh_p"], prepared["b_p"],
      prepared["fcw_p"], prepared["fcb_p"])

    return out_padded[:B, :out_dim]                                   # (B, O)


def init_params(key, vocab_size, embedding_dim, day_vocab_size,
                day_embedding_dim, hidden_dim, output_dim):
    D = embedding_dim + 1 + day_embedding_dim
    ks = jax.random.split(key, 8)
    s = 0.1
    return {
        "emb_candle": s * jax.random.normal(ks[0], (vocab_size, embedding_dim), jnp.float32),
        "emb_day":    s * jax.random.normal(ks[1], (day_vocab_size, day_embedding_dim), jnp.float32),
        # stored pre-transposed (unpadded); gate order [i, f, g, o]
        "w_ih_t":     s * jax.random.normal(ks[2], (D, 4 * hidden_dim), jnp.float32),
        "w_hh_t":     s * jax.random.normal(ks[3], (hidden_dim, 4 * hidden_dim), jnp.float32),
        "bias":      (s * jax.random.normal(ks[4], (1, 4 * hidden_dim), jnp.float32)
                      + s * jax.random.normal(ks[5], (1, 4 * hidden_dim), jnp.float32)),
        "fc_w_t":     s * jax.random.normal(ks[6], (hidden_dim, output_dim), jnp.float32),
        "fc_b":       s * jax.random.normal(ks[7], (1, output_dim), jnp.float32),
    }


def _reference_forward(x_candle, x_volume, x_day, params):
    """Pure-JAX reference replicating the PyTorch forward (unpadded H)."""
    emb_c = jnp.take(params["emb_candle"], x_candle, axis=0)
    emb_d = jnp.take(params["emb_day"], x_day, axis=0)
    x = jnp.concatenate([emb_c, x_volume[..., None].astype(jnp.float32), emb_d], axis=-1)
    B, T, D = x.shape
    H = params["w_hh_t"].shape[0]
    h = jnp.zeros((B, H), jnp.float32)
    c = jnp.zeros((B, H), jnp.float32)
    for t in range(T):
        g = x[:, t, :] @ params["w_ih_t"] + h @ params["w_hh_t"] + params["bias"]
        i = jax.nn.sigmoid(g[:, 0 * H:1 * H])
        f = jax.nn.sigmoid(g[:, 1 * H:2 * H])
        gg = jnp.tanh(g[:, 2 * H:3 * H])
        o = jax.nn.sigmoid(g[:, 3 * H:4 * H])
        c = f * c + i * gg
        h = o * jnp.tanh(c)
    return jax.nn.sigmoid(h @ params["fc_w_t"] + params["fc_b"])


if __name__ == "__main__":
    # Small, module-consistent shapes.
    vocab_size, embedding_dim = 16, 11
    day_vocab_size, day_embedding_dim = 7, 4
    hidden_dim, output_dim = 32, 1
    B, T = 2, 8   # batch, sequence length

    key = jax.random.PRNGKey(0)
    k_par, k_c, k_v, k_d = jax.random.split(key, 4)
    params = init_params(k_par, vocab_size, embedding_dim, day_vocab_size,
                         day_embedding_dim, hidden_dim, output_dim)

    # One-time weight preparation (padding hoisted out of the forward path).
    prepared = prepare_params(params)

    x_candle = jax.random.randint(k_c, (B, T), 0, vocab_size, dtype=jnp.int32)
    x_volume = jax.random.uniform(k_v, (B, T), dtype=jnp.float32)
    x_day = jax.random.randint(k_d, (B, T), 0, day_vocab_size, dtype=jnp.int32)

    out = candle_lstm_forward(x_candle, x_volume, x_day, prepared, out_dim=output_dim)
    out = jax.block_until_ready(out)

    ref = _reference_forward(x_candle, x_volume, x_day, params)
    assert out.shape == (B, output_dim)
    assert jnp.allclose(out, ref, atol=1e-5, rtol=1e-5)

    print("KERNEL_OK")
</pallas_src>

<mosaic_0001>
module attributes {stable_mosaic.version = 11 : i64} {
  func.func @candle_lstm_kernel(%arg0: memref<64x16xf32, #tpu.memory_space<vmem>>, %arg1: memref<16x128xf32, #tpu.memory_space<vmem>>, %arg2: memref<128x128xf32, #tpu.memory_space<vmem>>, %arg3: memref<1x128xf32, #tpu.memory_space<vmem>>, %arg4: memref<128x128xf32, #tpu.memory_space<vmem>>, %arg5: memref<1x128xf32, #tpu.memory_space<vmem>>, %arg6: memref<8x128xf32, #tpu.memory_space<vmem>>) attributes {dimension_semantics = [], scalar_prefetch = 0 : i64, scratch_operands = 0 : i64, tpu.core_type = #tpu.core_type<tc>} {
    %c0 = arith.constant 0 : index
    %c0_0 = arith.constant 0 : index
    %0 = vector.load %arg0[%c0, %c0_0] : memref<64x16xf32, #tpu.memory_space<vmem>>, vector<64x16xf32>
    %c0_1 = arith.constant 0 : index
    %c0_2 = arith.constant 0 : index
    %1 = vector.load %arg1[%c0_1, %c0_2] : memref<16x128xf32, #tpu.memory_space<vmem>>, vector<16x128xf32>
    %cst = arith.constant dense<0.000000e+00> : vector<64x128xf32>
    %2 = tpu.matmul %0, %1, %cst {dimension_numbers = #tpu.dot_dimension_numbers<[1], [0], [0], [1], [0, 0, 1, 1], [], []>} : vector<64x16xf32>, vector<16x128xf32>, vector<64x128xf32> -> vector<64x128xf32>
    %c0_3 = arith.constant 0 : index
    %c0_4 = arith.constant 0 : index
    %3 = vector.load %arg3[%c0_3, %c0_4] : memref<1x128xf32, #tpu.memory_space<vmem>>, vector<1x128xf32>
    %4 = vector.broadcast %3 : vector<1x128xf32> to vector<64x128xf32>
    %5 = arith.addf %2, %4 : vector<64x128xf32>
    %c0_5 = arith.constant 0 : index
    %c0_6 = arith.constant 0 : index
    %6 = vector.load %arg2[%c0_5, %c0_6] : memref<128x128xf32, #tpu.memory_space<vmem>>, vector<128x128xf32>
    %cst_7 = arith.constant 0.000000e+00 : f32
    %7 = vector.broadcast %cst_7 : f32 to vector<8x128xf32>
    %cst_8 = arith.constant 0.000000e+00 : f32
    %8 = vector.broadcast %cst_8 : f32 to vector<8x128xf32>
    %9 = vector.extract_strided_slice %5 {offsets = [0, 0], sizes = [8, 128], strides = [1, 1]} : vector<64x128xf32> to vector<8x128xf32>
    %cst_9 = arith.constant dense<0.000000e+00> : vector<8x128xf32>
    %10 = tpu.matmul %7, %6, %cst_9 {dimension_numbers = #tpu.dot_dimension_numbers<[1], [0], [0], [1], [0, 0, 1, 1], [], []>} : vector<8x128xf32>, vector<128x128xf32>, vector<8x128xf32> -> vector<8x128xf32>
    %11 = arith.addf %9, %10 : vector<8x128xf32>
    %12 = arith.negf %11 : vector<8x128xf32>
    %13 = math.exp %12 : vector<8x128xf32>
    %cst_10 = arith.constant 1.000000e+00 : f32
    %14 = vector.broadcast %cst_10 : f32 to vector<8x128xf32>
    %15 = arith.addf %14, %13 : vector<8x128xf32>
    %16 = arith.divf %14, %15 : vector<8x128xf32>
    %17 = math.tanh %11 : vector<8x128xf32>
    %c96_i32 = arith.constant 96 : i32
    %18 = tpu.dynamic_rotate %16 by %c96_i32 dim 1 : vector<8x128xf32>, i32 -> vector<8x128xf32>
    %c64_i32 = arith.constant 64 : i32
    %19 = tpu.dynamic_rotate %17 by %c64_i32 dim 1 : vector<8x128xf32>, i32 -> vector<8x128xf32>
    %c32_i32 = arith.constant 32 : i32
    %20 = tpu.dynamic_rotate %16 by %c32_i32 dim 1 : vector<8x128xf32>, i32 -> vector<8x128xf32>
    %21 = arith.mulf %18, %8 : vector<8x128xf32>
    %22 = arith.mulf %16, %19 : vector<8x128xf32>
    %23 = arith.addf %21, %22 : vector<8x128xf32>
    %24 = math.tanh %23 : vector<8x128xf32>
    %25 = arith.mulf %20, %24 : vector<8x128xf32>
    %26 = vector.extract_strided_slice %5 {offsets = [8, 0], sizes = [8, 128], strides = [1, 1]} : vector<64x128xf32> to vector<8x128xf32>
    %cst_11 = arith.constant dense<0.000000e+00> : vector<8x128xf32>
    %27 = tpu.matmul %25, %6, %cst_11 {dimension_numbers = #tpu.dot_dimension_numbers<[1], [0], [0], [1], [0, 0, 1, 1], [], []>} : vector<8x128xf32>, vector<128x128xf32>, vector<8x128xf32> -> vector<8x128xf32>
    %28 = arith.addf %26, %27 : vector<8x128xf32>
    %29 = arith.negf %28 : vector<8x128xf32>
    %30 = math.exp %29 : vector<8x128xf32>
    %cst_12 = arith.constant 1.000000e+00 : f32
    %31 = vector.broadcast %cst_12 : f32 to vector<8x128xf32>
    %32 = arith.addf %31, %30 : vector<8x128xf32>
    %33 = arith.divf %31, %32 : vector<8x128xf32>
    %34 = math.tanh %28 : vector<8x128xf32>
    %c96_i32_13 = arith.constant 96 : i32
    %35 = tpu.dynamic_rotate %33 by %c96_i32_13 dim 1 : vector<8x128xf32>, i32 -> vector<8x128xf32>
    %c64_i32_14 = arith.constant 64 : i32
    %36 = tpu.dynamic_rotate %34 by %c64_i32_14 dim 1 : vector<8x128xf32>, i32 -> vector<8x128xf32>
    %c32_i32_15 = arith.constant 32 : i32
    %37 = tpu.dynamic_rotate %33 by %c32_i32_15 dim 1 : vector<8x128xf32>, i32 -> vector<8x128xf32>
    %38 = arith.mulf %35, %23 : vector<8x128xf32>
    %39 = arith.mulf %33, %36 : vector<8x128xf32>
    %40 = arith.addf %38, %39 : vector<8x128xf32>
    %41 = math.tanh %40 : vector<8x128xf32>
    %42 = arith.mulf %37, %41 : vector<8x128xf32>
    %43 = vector.extract_strided_slice %5 {offsets = [16, 0], sizes = [8, 128], strides = [1, 1]} : vector<64x128xf32> to vector<8x128xf32>
    %cst_16 = arith.constant dense<0.000000e+00> : vector<8x128xf32>
    %44 = tpu.matmul %42, %6, %cst_16 {dimension_numbers = #tpu.dot_dimension_numbers<[1], [0], [0], [1], [0, 0, 1, 1], [], []>} : vector<8x128xf32>, vector<128x128xf32>, vector<8x128xf32> -> vector<8x128xf32>
    %45 = arith.addf %43, %44 : vector<8x128xf32>
    %46 = arith.negf %45 : vector<8x128xf32>
    %47 = math.exp %46 : vector<8x128xf32>
    %cst_17 = arith.constant 1.000000e+00 : f32
    %48 = vector.broadcast %cst_17 : f32 to vector<8x128xf32>
    %49 = arith.addf %48, %47 : vector<8x128xf32>
    %50 = arith.divf %48, %49 : vector<8x128xf32>
    %51 = math.tanh %45 : vector<8x128xf32>
    %c96_i32_18 = arith.constant 96 : i32
    %52 = tpu.dynamic_rotate %50 by %c96_i32_18 dim 1 : vector<8x128xf32>, i32 -> vector<8x128xf32>
    %c64_i32_19 = arith.constant 64 : i32
    %53 = tpu.dynamic_rotate %51 by %c64_i32_19 dim 1 : vector<8x128xf32>, i32 -> vector<8x128xf32>
    %c32_i32_20 = arith.constant 32 : i32
    %54 = tpu.dynamic_rotate %50 by %c32_i32_20 dim 1 : vector<8x128xf32>, i32 -> vector<8x128xf32>
    %55 = arith.mulf %52, %40 : vector<8x128xf32>
    %56 = arith.mulf %50, %53 : vector<8x128xf32>
    %57 = arith.addf %55, %56 : vector<8x128xf32>
    %58 = math.tanh %57 : vector<8x128xf32>
    %59 = arith.mulf %54, %58 : vector<8x128xf32>
    %60 = vector.extract_strided_slice %5 {offsets = [24, 0], sizes = [8, 128], strides = [1, 1]} : vector<64x128xf32> to vector<8x128xf32>
    %cst_21 = arith.constant dense<0.000000e+00> : vector<8x128xf32>
    %61 = tpu.matmul %59, %6, %cst_21 {dimension_numbers = #tpu.dot_dimension_numbers<[1], [0], [0], [1], [0, 0, 1, 1], [], []>} : vector<8x128xf32>, vector<128x128xf32>, vector<8x128xf32> -> vector<8x128xf32>
    %62 = arith.addf %60, %61 : vector<8x128xf32>
    %63 = arith.negf %62 : vector<8x128xf32>
    %64 = math.exp %63 : vector<8x128xf32>
    %cst_22 = arith.constant 1.000000e+00 : f32
    %65 = vector.broadcast %cst_22 : f32 to vector<8x128xf32>
    %66 = arith.addf %65, %64 : vector<8x128xf32>
    %67 = arith.divf %65, %66 : vector<8x128xf32>
    %68 = math.tanh %62 : vector<8x128xf32>
    %c96_i32_23 = arith.constant 96 : i32
    %69 = tpu.dynamic_rotate %67 by %c96_i32_23 dim 1 : vector<8x128xf32>, i32 -> vector<8x128xf32>
    %c64_i32_24 = arith.constant 64 : i32
    %70 = tpu.dynamic_rotate %68 by %c64_i32_24 dim 1 : vector<8x128xf32>, i32 -> vector<8x128xf32>
    %c32_i32_25 = arith.constant 32 : i32
    %71 = tpu.dynamic_rotate %67 by %c32_i32_25 dim 1 : vector<8x128xf32>, i32 -> vector<8x128xf32>
    %72 = arith.mulf %69, %57 : vector<8x128xf32>
    %73 = arith.mulf %67, %70 : vector<8x128xf32>
    %74 = arith.addf %72, %73 : vector<8x128xf32>
    %75 = math.tanh %74 : vector<8x128xf32>
    %76 = arith.mulf %71, %75 : vector<8x128xf32>
    %77 = vector.extract_strided_slice %5 {offsets = [32, 0], sizes = [8, 128], strides = [1, 1]} : vector<64x128xf32> to vector<8x128xf32>
    %cst_26 = arith.constant dense<0.000000e+00> : vector<8x128xf32>
    %78 = tpu.matmul %76, %6, %cst_26 {dimension_numbers = #tpu.dot_dimension_numbers<[1], [0], [0], [1], [0, 0, 1, 1], [], []>} : vector<8x128xf32>, vector<128x128xf32>, vector<8x128xf32> -> vector<8x128xf32>
    %79 = arith.addf %77, %78 : vector<8x128xf32>
    %80 = arith.negf %79 : vector<8x128xf32>
    %81 = math.exp %80 : vector<8x128xf32>
    %cst_27 = arith.constant 1.000000e+00 : f32
    %82 = vector.broadcast %cst_27 : f32 to vector<8x128xf32>
    %83 = arith.addf %82, %81 : vector<8x128xf32>
    %84 = arith.divf %82, %83 : vector<8x128xf32>
    %85 = math.tanh %79 : vector<8x128xf32>
    %c96_i32_28 = arith.constant 96 : i32
    %86 = tpu.dynamic_rotate %84 by %c96_i32_28 dim 1 : vector<8x128xf32>, i32 -> vector<8x128xf32>
    %c64_i32_29 = arith.constant 64 : i32
    %87 = tpu.dynamic_rotate %85 by %c64_i32_29 dim 1 : vector<8x128xf32>, i32 -> vector<8x128xf32>
    %c32_i32_30 = arith.constant 32 : i32
    %88 = tpu.dynamic_rotate %84 by %c32_i32_30 dim 1 : vector<8x128xf32>, i32 -> vector<8x128xf32>
    %89 = arith.mulf %86, %74 : vector<8x128xf32>
    %90 = arith.mulf %84, %87 : vector<8x128xf32>
    %91 = arith.addf %89, %90 : vector<8x128xf32>
    %92 = math.tanh %91 : vector<8x128xf32>
    %93 = arith.mulf %88, %92 : vector<8x128xf32>
    %94 = vector.extract_strided_slice %5 {offsets = [40, 0], sizes = [8, 128], strides = [1, 1]} : vector<64x128xf32> to vector<8x128xf32>
    %cst_31 = arith.constant dense<0.000000e+00> : vector<8x128xf32>
    %95 = tpu.matmul %93, %6, %cst_31 {dimension_numbers = #tpu.dot_dimension_numbers<[1], [0], [0], [1], [0, 0, 1, 1], [], []>} : vector<8x128xf32>, vector<128x128xf32>, vector<8x128xf32> -> vector<8x128xf32>
    %96 = arith.addf %94, %95 : vector<8x128xf32>
    %97 = arith.negf %96 : vector<8x128xf32>
    %98 = math.exp %97 : vector<8x128xf32>
    %cst_32 = arith.constant 1.000000e+00 : f32
    %99 = vector.broadcast %cst_32 : f32 to vector<8x128xf32>
    %100 = arith.addf %99, %98 : vector<8x128xf32>
    %101 = arith.divf %99, %100 : vector<8x128xf32>
    %102 = math.tanh %96 : vector<8x128xf32>
    %c96_i32_33 = arith.constant 96 : i32
    %103 = tpu.dynamic_rotate %101 by %c96_i32_33 dim 1 : vector<8x128xf32>, i32 -> vector<8x128xf32>
    %c64_i32_34 = arith.constant 64 : i32
    %104 = tpu.dynamic_rotate %102 by %c64_i32_34 dim 1 : vector<8x128xf32>, i32 -> vector<8x128xf32>
    %c32_i32_35 = arith.constant 32 : i32
    %105 = tpu.dynamic_rotate %101 by %c32_i32_35 dim 1 : vector<8x128xf32>, i32 -> vector<8x128xf32>
    %106 = arith.mulf %103, %91 : vector<8x128xf32>
    %107 = arith.mulf %101, %104 : vector<8x128xf32>
    %108 = arith.addf %106, %107 : vector<8x128xf32>
    %109 = math.tanh %108 : vector<8x128xf32>
    %110 = arith.mulf %105, %109 : vector<8x128xf32>
    %111 = vector.extract_strided_slice %5 {offsets = [48, 0], sizes = [8, 128], strides = [1, 1]} : vector<64x128xf32> to vector<8x128xf32>
    %cst_36 = arith.constant dense<0.000000e+00> : vector<8x128xf32>
    %112 = tpu.matmul %110, %6, %cst_36 {dimension_numbers = #tpu.dot_dimension_numbers<[1], [0], [0], [1], [0, 0, 1, 1], [], []>} : vector<8x128xf32>, vector<128x128xf32>, vector<8x128xf32> -> vector<8x128xf32>
    %113 = arith.addf %111, %112 : vector<8x128xf32>
    %114 = arith.negf %113 : vector<8x128xf32>
    %115 = math.exp %114 : vector<8x128xf32>
    %cst_37 = arith.constant 1.000000e+00 : f32
    %116 = vector.broadcast %cst_37 : f32 to vector<8x128xf32>
    %117 = arith.addf %116, %115 : vector<8x128xf32>
    %118 = arith.divf %116, %117 : vector<8x128xf32>
    %119 = math.tanh %113 : vector<8x128xf32>
    %c96_i32_38 = arith.constant 96 : i32
    %120 = tpu.dynamic_rotate %118 by %c96_i32_38 dim 1 : vector<8x128xf32>, i32 -> vector<8x128xf32>
    %c64_i32_39 = arith.constant 64 : i32
    %121 = tpu.dynamic_rotate %119 by %c64_i32_39 dim 1 : vector<8x128xf32>, i32 -> vector<8x128xf32>
    %c32_i32_40 = arith.constant 32 : i32
    %122 = tpu.dynamic_rotate %118 by %c32_i32_40 dim 1 : vector<8x128xf32>, i32 -> vector<8x128xf32>
    %123 = arith.mulf %120, %108 : vector<8x128xf32>
    %124 = arith.mulf %118, %121 : vector<8x128xf32>
    %125 = arith.addf %123, %124 : vector<8x128xf32>
    %126 = math.tanh %125 : vector<8x128xf32>
    %127 = arith.mulf %122, %126 : vector<8x128xf32>
    %128 = vector.extract_strided_slice %5 {offsets = [56, 0], sizes = [8, 128], strides = [1, 1]} : vector<64x128xf32> to vector<8x128xf32>
    %cst_41 = arith.constant dense<0.000000e+00> : vector<8x128xf32>
    %129 = tpu.matmul %127, %6, %cst_41 {dimension_numbers = #tpu.dot_dimension_numbers<[1], [0], [0], [1], [0, 0, 1, 1], [], []>} : vector<8x128xf32>, vector<128x128xf32>, vector<8x128xf32> -> vector<8x128xf32>
    %130 = arith.addf %128, %129 : vector<8x128xf32>
    %131 = arith.negf %130 : vector<8x128xf32>
    %132 = math.exp %131 : vector<8x128xf32>
    %cst_42 = arith.constant 1.000000e+00 : f32
    %133 = vector.broadcast %cst_42 : f32 to vector<8x128xf32>
    %134 = arith.addf %133, %132 : vector<8x128xf32>
    %135 = arith.divf %133, %134 : vector<8x128xf32>
    %136 = math.tanh %130 : vector<8x128xf32>
    %c96_i32_43 = arith.constant 96 : i32
    %137 = tpu.dynamic_rotate %135 by %c96_i32_43 dim 1 : vector<8x128xf32>, i32 -> vector<8x128xf32>
    %c64_i32_44 = arith.constant 64 : i32
    %138 = tpu.dynamic_rotate %136 by %c64_i32_44 dim 1 : vector<8x128xf32>, i32 -> vector<8x128xf32>
    %c32_i32_45 = arith.constant 32 : i32
    %139 = tpu.dynamic_rotate %135 by %c32_i32_45 dim 1 : vector<8x128xf32>, i32 -> vector<8x128xf32>
    %140 = arith.mulf %137, %125 : vector<8x128xf32>
    %141 = arith.mulf %135, %138 : vector<8x128xf32>
    %142 = arith.addf %140, %141 : vector<8x128xf32>
    %143 = math.tanh %142 : vector<8x128xf32>
    %144 = arith.mulf %139, %143 : vector<8x128xf32>
    %c0_46 = arith.constant 0 : index
    %c0_47 = arith.constant 0 : index
    %145 = vector.load %arg4[%c0_46, %c0_47] : memref<128x128xf32, #tpu.memory_space<vmem>>, vector<128x128xf32>
    %cst_48 = arith.constant dense<0.000000e+00> : vector<8x128xf32>
    %146 = tpu.matmul %144, %145, %cst_48 {dimension_numbers = #tpu.dot_dimension_numbers<[1], [0], [0], [1], [0, 0, 1, 1], [], []>} : vector<8x128xf32>, vector<128x128xf32>, vector<8x128xf32> -> vector<8x128xf32>
    %c0_49 = arith.constant 0 : index
    %c0_50 = arith.constant 0 : index
    %147 = vector.load %arg5[%c0_49, %c0_50] : memref<1x128xf32, #tpu.memory_space<vmem>>, vector<1x128xf32>
    %148 = vector.broadcast %147 : vector<1x128xf32> to vector<8x128xf32>
    %149 = arith.addf %146, %148 : vector<8x128xf32>
    %150 = arith.negf %149 : vector<8x128xf32>
    %151 = math.exp %150 : vector<8x128xf32>
    %cst_51 = arith.constant 1.000000e+00 : f32
    %152 = vector.broadcast %cst_51 : f32 to vector<8x128xf32>
    %153 = arith.addf %152, %151 : vector<8x128xf32>
    %154 = arith.divf %152, %153 : vector<8x128xf32>
    %c0_52 = arith.constant 0 : index
    %c0_53 = arith.constant 0 : index
    %155 = vector.load %arg6[%c0_52, %c0_53] : memref<8x128xf32, #tpu.memory_space<vmem>>, vector<8x128xf32>
    tpu.vector_store %arg6[%c0_52, %c0_53], %154 {strides = array<i32>} : memref<8x128xf32, #tpu.memory_space<vmem>>, vector<8x128xf32>,
    return
  }
}

</mosaic_0001>

<bundles_post_ra>
// kernel: candle_lstm_forward.1
= control target key start
LH: loop header
LB: loop body
LE: loop exit
PB: predicated region body
PF: predicated region fallthrough
CT: control target
= control target key end

     0   :  { %v1809_v0 = vmov 0.0|0.0   ;;  %vm1810_vm0 = vmmov 0   ;;  %v1811_v4 = vmov 0.0   ;;  %vm40_vm1 = vcmask 130048   ;;  %s1812_s21 = smov 32   ;;  %s1813_s22 = smov 96   ;;  %s2220_s2 = inlined_call_operand.vmem [shape: f32[128,128], index: 2, kind: input, shape index: {}]   ;;  %s2221_s1 = inlined_call_operand.vmem [shape: f32[16,128], index: 1, kind: input, shape index: {}]   ;;  %s2222_s0 = inlined_call_operand.vmem [shape: f32[64,16], index: 0, kind: input, shape index: {}]   ;;  %s2223_s3 = inlined_call_operand.vmem [shape: f32[1,128], index: 3, kind: input, shape index: {}]   ;;  %s2224_s4 = inlined_call_operand.vmem [shape: f32[128,128], index: 4, kind: input, shape index: {}]   ;;  %s2225_s5 = inlined_call_operand.vmem [shape: f32[1,128], index: 5, kind: input, shape index: {}]   ;;  %s2226_s6 = inlined_call_operand.vmem [shape: f32[8,128], index: 6, kind: output, shape index: {}]  }
   0x1   :  { %1519 = vmatprep.subr.bf16.mxu1 %v1809_v0  ;;  %v170_v1 = vld [vmem:[%s2220_s2] sm:$0xff]  ;;  %v171_v2 = vld [vmem:[%s2220_s2 + $0x8] sm:$0xff]  ;;  %v172_v3 = vld [vmem:[%s2220_s2 + $0x10] sm:$0xff]  ;;  %1232 = vmatprep.mubr.msk.f32.mxu1 %vm1810_vm0, %v1811_v4  ;;  %s1814_s25 = smov 64  }
   0x2   :  { %v1862_v5 = vpack.c.bf16 %v171_v2, %v170_v1  ;;  %v173_v6 = vld [vmem:[%s2220_s2 + $0x18] sm:$0xff]  ;;  %v174_v8 = vld [vmem:[%s2220_s2 + $0x20] sm:$0xff]  ;;  %v175_v9 = vld [vmem:[%s2220_s2 + $0x28] sm:$0xff] }
   0x3   :  { %v1868_v7 = vpack.c.bf16 %v173_v6, %v172_v3  ;;  %v31_v10 = vld [vmem:[%s2221_s1] sm:$0xff]  ;;  %v32_v11 = vld [vmem:[%s2221_s1 + $0x8] sm:$0xff]  ;;  %v1888_v14 = vpack.c.bf16 %v175_v9, %v174_v8  ;;  %v176_v15 = vld [vmem:[%s2220_s2 + $0x30] sm:$0xff] }
   0x4   :  { %1521 = vmatpush3.bf16.msra.mxu1 %v1862_v5  ;;  %v1515_v12 = vpack.c.bf16 %v32_v11, %v31_v10  ;;  %v23_v13 = vld [vmem:[%s2222_s0] sm:$0xff]  ;;  %v177_v16 = vld [vmem:[%s2220_s2 + $0x38] sm:$0xff]  ;;  %v24_v17 = vld [vmem:[%s2222_s0 + $0x8] sm:$0xff] }
   0x5   :  { %1522 = vmatprep.subr.bf16.mxu1 %v1809_v0  ;;  %1188 = vmatprep.mubr.msk.f32.mxu0 %vm40_vm1, %v23_v13  ;;  %v1902_v18 = vpack.c.bf16 %v177_v16, %v176_v15  ;;  %v178_v19 = vld [vmem:[%s2220_s2 + $0x40] sm:$0xff]  ;;  %v179_v20 = vld [vmem:[%s2220_s2 + $0x48] sm:$0xff]  ;;  %v180_v22 = vld [vmem:[%s2220_s2 + $0x50] sm:$0xff] }
   0x6   :  { %1516 = vmatprep.subr.bf16.mxu0 %v1515_v12  ;;  %v1915_v21 = vpack.c.bf16 %v179_v20, %v178_v19  ;;  %v181_v23 = vld [vmem:[%s2220_s2 + $0x58] sm:$0xff]  ;;  %v182_v25 = vld [vmem:[%s2220_s2 + $0x60] sm:$0xff]  ;;  %v183_v26 = vld [vmem:[%s2220_s2 + $0x68] sm:$0xff] }
   0x7   :  { %1518 = vmatpush3.bf16.msra.mxu0 %v1515_v12  ;;  %v1927_v24 = vpack.c.bf16 %v181_v23, %v180_v22  ;;  %v1939_v27 = vpack.c.bf16 %v183_v26, %v182_v25  ;;  %v184_v28 = vld [vmem:[%s2220_s2 + $0x70] sm:$0xff]  ;;  %v185_v29 = vld [vmem:[%s2220_s2 + $0x78] sm:$0xff]  ;;  %v1988_v33 = vld [vmem:[%s2223_s3] ss:$0 sm:$0xff] }
   0x8   :  { %1524 = vmatpush3.bf16.msra.mxu1 %v1868_v7  ;;  %1543 = vmatprep.subr.bf16.mxu0 %v1809_v0  ;;  %v1951_v30 = vpack.c.bf16 %v185_v29, %v184_v28  ;;  %v25_v41 = vld [vmem:[%s2222_s0 + $0x10] sm:$0xff]  ;;  %v26_v42 = vld [vmem:[%s2222_s0 + $0x18] sm:$0xff]  ;;  %v27_v43 = vld [vmem:[%s2222_s0 + $0x20] sm:$0xff] }
   0x9   :  { %1525 = vmatprep.subr.bf16.mxu1 %v1809_v0  ;;  %v28_v44 = vld [vmem:[%s2222_s0 + $0x28] sm:$0xff]  ;;  %v29_v45 = vld [vmem:[%s2222_s0 + $0x30] sm:$0xff]  ;;  %v30_v47 = vld [vmem:[%s2222_s0 + $0x38] sm:$0xff] }
   0xa   :  { %1189 = vmatmul.mubr.msk.f32.vlgmr.msra.gmra.mrb[0].mxu0 %vm40_vm1, %v24_v17 }
   0xb   :  { %1545 = vmatpush3.bf16.msra.mxu0 %v1862_v5  ;;  %1191 = vmatprep.mubr.msk.f32.mxu0 %vm40_vm1, %v25_v41 }
   0xc   :  { %1527 = vmatpush3.bf16.msra.mxu1 %v1888_v14  ;;  %1546 = vmatprep.subr.bf16.mxu0 %v1809_v0 }
   0xd   :  { %1528 = vmatprep.subr.bf16.mxu1 %v1809_v0 }
   0xe   :  { %1192 = vmatmul.mubr.msk.f32.gmra.mrb[2].mxu0 %vm40_vm1, %v26_v42 }
   0xf   :  { %1548 = vmatpush3.bf16.msra.mxu0 %v1868_v7  ;;  %1194 = vmatprep.mubr.msk.f32.mxu0 %vm40_vm1, %v27_v43 }
  0x10   :  { %1530 = vmatpush3.bf16.msra.mxu1 %v1902_v18  ;;  %1549 = vmatprep.subr.bf16.mxu0 %v1809_v0 }
  0x11   :  { %1531 = vmatprep.subr.bf16.mxu1 %v1809_v0 }
  0x12   :  { %1195 = vmatmul.mubr.msk.f32.gmra.mrb[4].mxu0 %vm40_vm1, %v28_v44 }
  0x13   :  { %1551 = vmatpush3.bf16.msra.mxu0 %v1888_v14  ;;  %1197 = vmatprep.mubr.msk.f32.mxu0 %vm40_vm1, %v29_v45 }
  0x14   :  { %1533 = vmatpush3.bf16.msra.mxu1 %v1915_v21  ;;  %1552 = vmatprep.subr.bf16.mxu0 %v1809_v0 }
  0x15   :  { %1534 = vmatprep.subr.bf16.mxu1 %v1809_v0 }
  0x16   :  { %1198 = vmatmul.mubr.msk.f32.gmra.mrb[6].mxu0 %vm40_vm1, %v30_v47 }
  0x17   :  { %1554 = vmatpush3.bf16.msra.mxu0 %v1902_v18  ;;  %1267 = vmatprep.mubr.msk.f32.mxu0 %vm1810_vm0, %v1811_v4 }
  0x18   :  { %1536 = vmatpush3.bf16.msra.mxu1 %v1927_v24  ;;  %1555 = vmatprep.subr.bf16.mxu0 %v1809_v0 }
  0x19   :  { %1537 = vmatprep.subr.bf16.mxu1 %v1809_v0 }
  0x1b   :  { %1557 = vmatpush3.bf16.msra.mxu0 %v1915_v21 }
  0x1c   :  { %1539 = vmatpush3.bf16.msra.mxu1 %v1939_v27  ;;  %1558 = vmatprep.subr.bf16.mxu0 %v1809_v0 }
  0x1d   :  { %1540 = vmatprep.subr.bf16.mxu1 %v1809_v0 }
  0x1f   :  { %1560 = vmatpush3.bf16.msra.mxu0 %v1927_v24 }
  0x20   :  { %1542 = vmatpush3.bf16.msra.mxu1 %v1951_v30  ;;  %1561 = vmatprep.subr.bf16.mxu0 %v1809_v0 }
  0x21   :  { %1567 = vmatprep.subr.bf16.mxu1 %v1809_v0 }
  0x23   :  { %1233 = vmatmul.mubr.f32.vlgmr.msra.gmra.mrb[0].mxu1 %v1811_v4  ;;  %1563 = vmatpush3.bf16.msra.mxu0 %v1939_v27 }
  0x24   :  { %1569 = vmatpush3.bf16.msra.mxu1 %v1862_v5  ;;  %1302 = vmatprep.mubr.msk.f32.mxu1 %vm1810_vm0, %v1811_v4 }
  0x25   :  { %1570 = vmatprep.subr.bf16.mxu1 %v1809_v0  ;;  %1564 = vmatprep.subr.bf16.mxu0 %v1809_v0 }
  0x27   :  { %1566 = vmatpush3.bf16.msra.mxu0 %v1951_v30 }
  0x28   :  { %1572 = vmatpush3.bf16.msra.mxu1 %v1868_v7  ;;  %1591 = vmatprep.subr.bf16.mxu0 %v1809_v0 }
  0x29   :  { %1573 = vmatprep.subr.bf16.mxu1 %v1809_v0 }
  0x2c   :  { %1575 = vmatpush3.bf16.msra.mxu1 %v1888_v14 }
  0x2d   :  { %1576 = vmatprep.subr.bf16.mxu1 %v1809_v0 }
  0x30   :  { %1578 = vmatpush3.bf16.msra.mxu1 %v1902_v18 }
  0x31   :  { %1579 = vmatprep.subr.bf16.mxu1 %v1809_v0 }
  0x34   :  { %1581 = vmatpush3.bf16.msra.mxu1 %v1915_v21 }
  0x35   :  { %1582 = vmatprep.subr.bf16.mxu1 %v1809_v0 }
  0x38   :  { %1584 = vmatpush3.bf16.msra.mxu1 %v1927_v24 }
  0x39   :  { %1585 = vmatprep.subr.bf16.mxu1 %v1809_v0 }
  0x3c   :  { %1587 = vmatpush3.bf16.msra.mxu1 %v1939_v27 }
  0x3d   :  { %1588 = vmatprep.subr.bf16.mxu1 %v1809_v0 }
  0x40   :  { %1590 = vmatpush3.bf16.msra.mxu1 %v1951_v30 }
  0x41   :  { %1615 = vmatprep.subr.bf16.mxu1 %v1809_v0 }
  0xdd   :  { %v1983_v31 = vpop.f32.mrb[0].mxu0 }
  0xde   :  { %v131_v32 = vpop.f32.mrb[1].mxu0  ;;  %v137_v63 = vadd.f32 %v1983_v31, %v1988_v33 }
  0xdf   :  { %v132_v34 = vadd.f32 %v1988_v33, %v131_v32 }
  0xe1   :  { %v2038_v57 = vpop.f32.mrb[2].mxu0 }
  0xe2   :  { %v141_v58 = vpop.f32.mrb[3].mxu0  ;;  %v147_v44 = vadd.f32 %v2038_v57, %v1988_v33 }
  0xe3   :  { %v142_v23 = vadd.f32 %v1988_v33, %v141_v58 }
  0xe5   :  { %v2040_v59 = vpop.f32.mrb[4].mxu0 }
  0xe6   :  { %v2042_v60 = vpop.f32.mrb[5].mxu0 }
  0xe9   :  { %v2044_v61 = vpop.f32.mrb[6].mxu0 }
  0xea   :  { %v2046_v62 = vpop.f32.mrb[7].mxu0 }
  0xf6   :  { %v252_v35 = vpop.f32.mrb[0].mxu1 }
  0xf7   :  { %v256_v36 = vadd.f32 %v252_v35, %v132_v34  ;;  %v1234_v37 = vpop.f32.mrb[1].mxu1 }
  0xf9   :  { %v1011_v38 = vmul.f32 -1.442695, %v256_v36 }
  0xfb   :  { %1741 = vpow2.f32 %v1011_v38 }
 0x105   :  { %v1742_v39 = vpop.eup %1741 }
 0x106   :  { %v260_v40 = vadd.f32 1.0, %v1742_v39 }
 0x108   :  { %1743 = vrcp.f32 %v260_v40 }
 0x109   :  { %1745 = vtanh.f32 %v256_v36 }
 0x112   :  { %v1744_v46 = vpop.eup %1743 }
 0x113   :  { %268 = vrot.lane.b32.xlu1 %v1744_v46, %s1812_s21  ;;  %264 = vrot.lane.b32.xlu0 %v1744_v46, %s1813_s22  ;;  %v1746_v48 = vpop.eup %1745 }
 0x117   :  { %266 = vrot.lane.b32.xlu0 %v1746_v48, %s1814_s25 }
 0x185   :  { %v265_v49 = vpop.permute.xlu0 %264  ;;  %v269_v55 = vpop.permute.xlu1 %268 }
 0x186   :  { %v270_v51 = vmul.f32 0.0, %v265_v49 }
 0x189   :  { %v267_v50 = vpop.permute.xlu0 %266 }
 0x18a   :  { %v271_v52 = vmul.f32 %v1744_v46, %v267_v50 }
 0x18c   :  { %v272_v53 = vadd.f32 %v271_v52, %v270_v51 }
 0x18e   :  { %1747 = vtanh.f32 %v272_v53 }
 0x198   :  { %v1748_v54 = vpop.eup %1747 }
 0x199   :  { %v274_v56 = vmul.f32 %v1748_v54, %v269_v55 }
 0x19b   :  { %1268 = vmatmul.mubr.f32.vlgmr.msra.gmra.mrb[8].mxu0 %v274_v56 }
 0x19c   :  { %1593 = vmatpush3.bf16.msra.mxu0 %v1862_v5  ;;  %1337 = vmatprep.mubr.msk.f32.mxu0 %vm1810_vm0, %v1811_v4 }
 0x19d   :  { %1594 = vmatprep.subr.bf16.mxu0 %v1809_v0 }
 0x1a0   :  { %1596 = vmatpush3.bf16.msra.mxu0 %v1868_v7 }
 0x1a1   :  { %1597 = vmatprep.subr.bf16.mxu0 %v1809_v0 }
 0x1a4   :  { %1599 = vmatpush3.bf16.msra.mxu0 %v1888_v14 }
 0x1a5   :  { %1600 = vmatprep.subr.bf16.mxu0 %v1809_v0 }
 0x1a8   :  { %1602 = vmatpush3.bf16.msra.mxu0 %v1902_v18 }
 0x1a9   :  { %1603 = vmatprep.subr.bf16.mxu0 %v1809_v0 }
 0x1ac   :  { %1605 = vmatpush3.bf16.msra.mxu0 %v1915_v21 }
 0x1ad   :  { %1606 = vmatprep.subr.bf16.mxu0 %v1809_v0 }
 0x1b0   :  { %1608 = vmatpush3.bf16.msra.mxu0 %v1927_v24 }
 0x1b1   :  { %1609 = vmatprep.subr.bf16.mxu0 %v1809_v0 }
 0x1b4   :  { %1611 = vmatpush3.bf16.msra.mxu0 %v1939_v27 }
 0x1b5   :  { %1612 = vmatprep.subr.bf16.mxu0 %v1809_v0 }
 0x1b8   :  { %1614 = vmatpush3.bf16.msra.mxu0 %v1951_v30 }
 0x1b9   :  { %1639 = vmatprep.subr.bf16.mxu0 %v1809_v0 }
 0x26e   :  { %v341_v1 = vpop.f32.mrb[8].mxu0 }
 0x26f   :  { %v345_v2 = vadd.f32 %v341_v1, %v137_v63  ;;  %v1269_v3 = vpop.f32.mrb[9].mxu0 }
 0x271   :  { %v1012_v6 = vmul.f32 -1.442695, %v345_v2  ;;  %1749 = vtanh.f32 %v345_v2  ;;  %v152_v2 = vadd.f32 %v1988_v33, %v2042_v60 }
 0x273   :  { %1751 = vpow2.f32 %v1012_v6 }
 0x27b   :  { %v1750_v8 = vpop.eup %1749 }
 0x27c   :  { %355 = vrot.lane.b32.xlu0 %v1750_v8, %s1814_s25 }
 0x27d   :  { %v1752_v9 = vpop.eup %1751 }
 0x27e   :  { %v349_v10 = vadd.f32 1.0, %v1752_v9 }
 0x280   :  { %1753 = vrcp.f32 %v349_v10 }
 0x28a   :  { %v1754_v11 = vpop.eup %1753 }
 0x28b   :  { %353 = vrot.lane.b32.xlu1 %v1754_v11, %s1813_s22 }
 0x28f   :  { %357 = vrot.lane.b32.xlu1 %v1754_v11, %s1812_s21 }
 0x2ee   :  { %v356_v12 = vpop.permute.xlu0 %355 }
 0x2ef   :  { %v360_v15 = vmul.f32 %v1754_v11, %v356_v12 }
 0x2fd   :  { %v354_v13 = vpop.permute.xlu1 %353 }
 0x2fe   :  { %v359_v16 = vmul.f32 %v354_v13, %v272_v53 }
 0x300   :  { %v361_v17 = vadd.f32 %v360_v15, %v359_v16 }
 0x301   :  { %v358_v20 = vpop.permute.xlu1 %357 }
 0x302   :  { %1755 = vtanh.f32 %v361_v17 }
 0x30c   :  { %v1756_v19 = vpop.eup %1755 }
 0x30d   :  { %v363_v22 = vmul.f32 %v1756_v19, %v358_v20 }
 0x30f   :  { %1303 = vmatmul.mubr.f32.vlgmr.msra.gmra.mrb[2].mxu1 %v363_v22 }
 0x310   :  { %1617 = vmatpush3.bf16.msra.mxu1 %v1862_v5  ;;  %1372 = vmatprep.mubr.msk.f32.mxu1 %vm1810_vm0, %v1811_v4 }
 0x311   :  { %1618 = vmatprep.subr.bf16.mxu1 %v1809_v0 }
 0x314   :  { %1620 = vmatpush3.bf16.msra.mxu1 %v1868_v7 }
 0x315   :  { %1621 = vmatprep.subr.bf16.mxu1 %v1809_v0 }
 0x318   :  { %1623 = vmatpush3.bf16.msra.mxu1 %v1888_v14 }
 0x319   :  { %1624 = vmatprep.subr.bf16.mxu1 %v1809_v0 }
 0x31c   :  { %1626 = vmatpush3.bf16.msra.mxu1 %v1902_v18 }
 0x31d   :  { %1627 = vmatprep.subr.bf16.mxu1 %v1809_v0 }
 0x320   :  { %1629 = vmatpush3.bf16.msra.mxu1 %v1915_v21 }
 0x321   :  { %1630 = vmatprep.subr.bf16.mxu1 %v1809_v0 }
 0x324   :  { %1632 = vmatpush3.bf16.msra.mxu1 %v1927_v24 }
 0x325   :  { %1633 = vmatprep.subr.bf16.mxu1 %v1809_v0 }
 0x328   :  { %1635 = vmatpush3.bf16.msra.mxu1 %v1939_v27 }
 0x329   :  { %1636 = vmatprep.subr.bf16.mxu1 %v1809_v0 }
 0x32c   :  { %1638 = vmatpush3.bf16.msra.mxu1 %v1951_v30 }
 0x32d   :  { %1663 = vmatprep.subr.bf16.mxu1 %v1809_v0 }
 0x3e2   :  { %v430_v25 = vpop.f32.mrb[2].mxu1 }
 0x3e3   :  { %v434_v26 = vadd.f32 %v430_v25, %v142_v23  ;;  %v1304_v28 = vpop.f32.mrb[3].mxu1 }
 0x3e5   :  { %v1013_v29 = vmul.f32 -1.442695, %v434_v26  ;;  %1757 = vtanh.f32 %v434_v26 }
 0x3e7   :  { %1759 = vpow2.f32 %v1013_v29 }
 0x3ef   :  { %v1758_v31 = vpop.eup %1757 }
 0x3f0   :  { %444 = vrot.lane.b32.xlu1 %v1758_v31, %s1814_s25 }
 0x3f1   :  { %v1760_v32 = vpop.eup %1759 }
 0x3f2   :  { %v438_v34 = vadd.f32 1.0, %v1760_v32 }
 0x3f4   :  { %1761 = vrcp.f32 %v438_v34 }
 0x3fe   :  { %v1762_v35 = vpop.eup %1761 }
 0x3ff   :  { %442 = vrot.lane.b32.xlu0 %v1762_v35, %s1813_s22 }
 0x403   :  { %446 = vrot.lane.b32.xlu0 %v1762_v35, %s1812_s21 }
 0x462   :  { %v445_v36 = vpop.permute.xlu1 %444 }
 0x463   :  { %v449_v38 = vmul.f32 %v1762_v35, %v445_v36  ;;  %v162_v36 = vadd.f32 %v1988_v33, %v2046_v62 }
 0x471   :  { %v443_v37 = vpop.permute.xlu0 %442 }
 0x472   :  { %v448_v39 = vmul.f32 %v443_v37, %v361_v17 }
 0x474   :  { %v450_v40 = vadd.f32 %v449_v38, %v448_v39 }
 0x475   :  { %v447_v42 = vpop.permute.xlu0 %446 }
 0x476   :  { %1763 = vtanh.f32 %v450_v40 }
 0x480   :  { %v1764_v41 = vpop.eup %1763 }
 0x481   :  { %v452_v43 = vmul.f32 %v1764_v41, %v447_v42 }
 0x483   :  { %1338 = vmatmul.mubr.f32.vlgmr.msra.gmra.mrb[10].mxu0 %v452_v43 }
 0x484   :  { %1641 = vmatpush3.bf16.msra.mxu0 %v1862_v5  ;;  %1407 = vmatprep.mubr.msk.f32.mxu0 %vm1810_vm0, %v1811_v4 }
 0x485   :  { %1642 = vmatprep.subr.bf16.mxu0 %v1809_v0 }
 0x488   :  { %1644 = vmatpush3.bf16.msra.mxu0 %v1868_v7 }
 0x489   :  { %1645 = vmatprep.subr.bf16.mxu0 %v1809_v0 }
 0x48c   :  { %1647 = vmatpush3.bf16.msra.mxu0 %v1888_v14 }
 0x48d   :  { %1648 = vmatprep.subr.bf16.mxu0 %v1809_v0 }
 0x490   :  { %1650 = vmatpush3.bf16.msra.mxu0 %v1902_v18 }
 0x491   :  { %1651 = vmatprep.subr.bf16.mxu0 %v1809_v0 }
 0x494   :  { %1653 = vmatpush3.bf16.msra.mxu0 %v1915_v21 }
 0x495   :  { %1654 = vmatprep.subr.bf16.mxu0 %v1809_v0 }
 0x498   :  { %1656 = vmatpush3.bf16.msra.mxu0 %v1927_v24 }
 0x499   :  { %1657 = vmatprep.subr.bf16.mxu0 %v1809_v0 }
 0x49c   :  { %1659 = vmatpush3.bf16.msra.mxu0 %v1939_v27 }
 0x49d   :  { %1660 = vmatprep.subr.bf16.mxu0 %v1809_v0 }
 0x4a0   :  { %1662 = vmatpush3.bf16.msra.mxu0 %v1951_v30 }
 0x4a1   :  { %1687 = vmatprep.subr.bf16.mxu0 %v1809_v0 }
 0x556   :  { %v519_v45 = vpop.f32.mrb[10].mxu0 }
 0x557   :  { %v523_v46 = vadd.f32 %v519_v45, %v147_v44  ;;  %v1339_v47 = vpop.f32.mrb[11].mxu0 }
 0x559   :  { %v1014_v48 = vmul.f32 -1.442695, %v523_v46  ;;  %1765 = vtanh.f32 %v523_v46 }
 0x55b   :  { %1767 = vpow2.f32 %v1014_v48 }
 0x563   :  { %v1766_v49 = vpop.eup %1765 }
 0x564   :  { %533 = vrot.lane.b32.xlu0 %v1766_v49, %s1814_s25 }
 0x565   :  { %v1768_v50 = vpop.eup %1767 }
 0x566   :  { %v527_v51 = vadd.f32 1.0, %v1768_v50 }
 0x568   :  { %1769 = vrcp.f32 %v527_v51  ;;  %v167_v51 = vadd.f32 %v2044_v61, %v1988_v33 }
 0x572   :  { %v1770_v52 = vpop.eup %1769 }
 0x573   :  { %531 = vrot.lane.b32.xlu1 %v1770_v52, %s1813_s22 }
 0x577   :  { %535 = vrot.lane.b32.xlu1 %v1770_v52, %s1812_s21 }
 0x5d6   :  { %v534_v53 = vpop.permute.xlu0 %533 }
 0x5d7   :  { %v538_v55 = vmul.f32 %v1770_v52, %v534_v53  ;;  %v898_v52 = vld [vmem:[%s2224_s4] sm:$0xff]  ;;  %v899_v53 = vld [vmem:[%s2224_s4 + $0x8] sm:$0xff] }
 0x5e5   :  { %v532_v54 = vpop.permute.xlu1 %531 }
 0x5e6   :  { %v537_v56 = vmul.f32 %v532_v54, %v450_v40 }
 0x5e8   :  { %v539_v57 = vadd.f32 %v538_v55, %v537_v56  ;;  %v1712_v55 = vpack.c.bf16 %v899_v53, %v898_v52 }
 0x5e9   :  { %v536_v63 = vpop.permute.xlu1 %535 }
 0x5ea   :  { %1771 = vtanh.f32 %v539_v57 }
 0x5f4   :  { %v1772_v58 = vpop.eup %1771 }
 0x5f5   :  { %v541_v1 = vmul.f32 %v1772_v58, %v536_v63  ;;  %v900_v58 = vld [vmem:[%s2224_s4 + $0x10] sm:$0xff] }
 0x5f7   :  { %1373 = vmatmul.mubr.f32.vlgmr.msra.gmra.mrb[4].mxu1 %v541_v1  ;;  %v902_v1 = vld [vmem:[%s2224_s4 + $0x20] sm:$0xff] }
 0x5f8   :  { %1665 = vmatpush3.bf16.msra.mxu1 %v1862_v5  ;;  %1442 = vmatprep.mubr.msk.f32.mxu1 %vm1810_vm0, %v1811_v4 }
 0x5f9   :  { %1666 = vmatprep.subr.bf16.mxu1 %v1809_v0 }
 0x5fc   :  { %1668 = vmatpush3.bf16.msra.mxu1 %v1868_v7 }
 0x5fd   :  { %1669 = vmatprep.subr.bf16.mxu1 %v1809_v0 }
 0x600   :  { %1671 = vmatpush3.bf16.msra.mxu1 %v1888_v14 }
 0x601   :  { %1672 = vmatprep.subr.bf16.mxu1 %v1809_v0 }
 0x604   :  { %1674 = vmatpush3.bf16.msra.mxu1 %v1902_v18 }
 0x605   :  { %1675 = vmatprep.subr.bf16.mxu1 %v1809_v0 }
 0x608   :  { %1677 = vmatpush3.bf16.msra.mxu1 %v1915_v21 }
 0x609   :  { %1678 = vmatprep.subr.bf16.mxu1 %v1809_v0 }
 0x60c   :  { %1680 = vmatpush3.bf16.msra.mxu1 %v1927_v24 }
 0x60d   :  { %1681 = vmatprep.subr.bf16.mxu1 %v1809_v0 }
 0x610   :  { %1683 = vmatpush3.bf16.msra.mxu1 %v1939_v27 }
 0x611   :  { %1684 = vmatprep.subr.bf16.mxu1 %v1809_v0 }
 0x614   :  { %1686 = vmatpush3.bf16.msra.mxu1 %v1951_v30 }
 0x615   :  { %1711 = vmatprep.subr.bf16.mxu1 %v1809_v0 }
 0x6ca   :  { %v608_v3 = vpop.f32.mrb[4].mxu1 }
 0x6cb   :  { %v612_v6 = vadd.f32 %v608_v3, %v152_v2  ;;  %v1374_v8 = vpop.f32.mrb[5].mxu1  ;;  %v903_v2 = vld [vmem:[%s2224_s4 + $0x28] sm:$0xff] }
 0x6cc   :  { %v1718_v3 = vpack.c.bf16 %v903_v2, %v902_v1  ;;  %v905_v8 = vld [vmem:[%s2224_s4 + $0x38] sm:$0xff] }
 0x6cd   :  { %v1015_v9 = vmul.f32 -1.442695, %v612_v6  ;;  %1773 = vtanh.f32 %v612_v6  ;;  %v904_v6 = vld [vmem:[%s2224_s4 + $0x30] sm:$0xff] }
 0x6cf   :  { %1775 = vpow2.f32 %v1015_v9  ;;  %v1721_v9 = vpack.c.bf16 %v905_v8, %v904_v6 }
 0x6d7   :  { %v1774_v10 = vpop.eup %1773 }
 0x6d8   :  { %622 = vrot.lane.b32.xlu1 %v1774_v10, %s1814_s25 }
 0x6d9   :  { %v1776_v11 = vpop.eup %1775 }
 0x6da   :  { %v616_v12 = vadd.f32 1.0, %v1776_v11 }
 0x6dc   :  { %1777 = vrcp.f32 %v616_v12  ;;  %v906_v12 = vld [vmem:[%s2224_s4 + $0x40] sm:$0xff] }
 0x6e6   :  { %v1778_v13 = vpop.eup %1777 }
 0x6e7   :  { %620 = vrot.lane.b32.xlu0 %v1778_v13, %s1813_s22 }
 0x6eb   :  { %624 = vrot.lane.b32.xlu0 %v1778_v13, %s1812_s21 }
 0x74a   :  { %v623_v15 = vpop.permute.xlu1 %622 }
 0x74b   :  { %v627_v60 = vmul.f32 %v1778_v13, %v623_v15  ;;  %v907_v13 = vld [vmem:[%s2224_s4 + $0x48] sm:$0xff] }
 0x759   :  { %v621_v16 = vpop.permute.xlu0 %620 }
 0x75a   :  { %v626_v17 = vmul.f32 %v621_v16, %v539_v57  ;;  %v1724_v16 = vpack.c.bf16 %v907_v13, %v906_v12 }
 0x75c   :  { %v628_v19 = vadd.f32 %v627_v60, %v626_v17  ;;  %v908_v60 = vld [vmem:[%s2224_s4 + $0x50] sm:$0xff]  ;;  %v909_v17 = vld [vmem:[%s2224_s4 + $0x58] sm:$0xff] }
 0x75d   :  { %v625_v22 = vpop.permute.xlu0 %624 }
 0x75e   :  { %1779 = vtanh.f32 %v628_v19 }
 0x768   :  { %v1780_v20 = vpop.eup %1779 }
 0x769   :  { %v630_v23 = vmul.f32 %v1780_v20, %v625_v22  ;;  %v910_v20 = vld [vmem:[%s2224_s4 + $0x60] sm:$0xff]  ;;  %v911_v22 = vld [vmem:[%s2224_s4 + $0x68] sm:$0xff] }
 0x76b   :  { %1408 = vmatmul.mubr.f32.vlgmr.msra.gmra.mrb[12].mxu0 %v630_v23  ;;  %v1730_v23 = vpack.c.bf16 %v911_v22, %v910_v20 }
 0x76c   :  { %1689 = vmatpush3.bf16.msra.mxu0 %v1862_v5  ;;  %1477 = vmatprep.mubr.msk.f32.mxu0 %vm1810_vm0, %v1811_v4  ;;  %v157_v5 = vadd.f32 %v2040_v59, %v1988_v33  ;;  %v901_v33 = vld [vmem:[%s2224_s4 + $0x18] sm:$0xff] }
 0x76d   :  { %1690 = vmatprep.subr.bf16.mxu0 %v1809_v0  ;;  %v1715_v61 = vpack.c.bf16 %v901_v33, %v900_v58 }
 0x770   :  { %1692 = vmatpush3.bf16.msra.mxu0 %v1868_v7 }
 0x771   :  { %1693 = vmatprep.subr.bf16.mxu0 %v1809_v0 }
 0x774   :  { %1695 = vmatpush3.bf16.msra.mxu0 %v1888_v14 }
 0x775   :  { %1696 = vmatprep.subr.bf16.mxu0 %v1809_v0 }
 0x778   :  { %1698 = vmatpush3.bf16.msra.mxu0 %v1902_v18 }
 0x779   :  { %1699 = vmatprep.subr.bf16.mxu0 %v1809_v0 }
 0x77c   :  { %1701 = vmatpush3.bf16.msra.mxu0 %v1915_v21 }
 0x77d   :  { %1702 = vmatprep.subr.bf16.mxu0 %v1809_v0 }
 0x780   :  { %1704 = vmatpush3.bf16.msra.mxu0 %v1927_v24 }
 0x781   :  { %1705 = vmatprep.subr.bf16.mxu0 %v1809_v0 }
 0x784   :  { %1707 = vmatpush3.bf16.msra.mxu0 %v1939_v27 }
 0x785   :  { %1708 = vmatprep.subr.bf16.mxu0 %v1809_v0 }
 0x788   :  { %1710 = vmatpush3.bf16.msra.mxu0 %v1951_v30 }
 0x83e   :  { %v697_v7 = vpop.f32.mrb[12].mxu0 }
 0x83f   :  { %v701_v14 = vadd.f32 %v697_v7, %v157_v5  ;;  %v1409_v18 = vpop.f32.mrb[13].mxu0  ;;  %v912_v5 = vld [vmem:[%s2224_s4 + $0x70] sm:$0xff]  ;;  %v913_v7 = vld [vmem:[%s2224_s4 + $0x78] sm:$0xff] }
 0x840   :  { %v1733_v18 = vpack.c.bf16 %v913_v7, %v912_v5 }
 0x841   :  { %v1016_v25 = vmul.f32 -1.442695, %v701_v14  ;;  %1781 = vtanh.f32 %v701_v14 }
 0x843   :  { %1783 = vpow2.f32 %v1016_v25 }
 0x84b   :  { %v1782_v21 = vpop.eup %1781 }
 0x84c   :  { %711 = vrot.lane.b32.xlu0 %v1782_v21, %s1814_s25 }
 0x84d   :  { %v1784_v24 = vpop.eup %1783 }
 0x84e   :  { %v705_v26 = vadd.f32 1.0, %v1784_v24 }
 0x850   :  { %1785 = vrcp.f32 %v705_v26 }
 0x85a   :  { %v1786_v27 = vpop.eup %1785 }
 0x85b   :  { %709 = vrot.lane.b32.xlu1 %v1786_v27, %s1813_s22 }
 0x85f   :  { %713 = vrot.lane.b32.xlu1 %v1786_v27, %s1812_s21 }
 0x8be   :  { %v712_v30 = vpop.permute.xlu0 %711 }
 0x8bf   :  { %v716_v59 = vmul.f32 %v1786_v27, %v712_v30 }
 0x8cd   :  { %v710_v28 = vpop.permute.xlu1 %709 }
 0x8ce   :  { %v715_v29 = vmul.f32 %v710_v28, %v628_v19  ;;  %v1727_v19 = vpack.c.bf16 %v909_v17, %v908_v60 }
 0x8d0   :  { %v717_v31 = vadd.f32 %v716_v59, %v715_v29  ;;  %v1019_v59 = vld [vmem:[%s2225_s5] ss:$0 sm:$0xff] }
 0x8d1   :  { %v714_v34 = vpop.permute.xlu1 %713 }
 0x8d2   :  { %1787 = vtanh.f32 %v717_v31 }
 0x8dc   :  { %v1788_v32 = vpop.eup %1787 }
 0x8dd   :  { %v719_v35 = vmul.f32 %v1788_v32, %v714_v34 }
 0x8df   :  { %1443 = vmatmul.mubr.f32.vlgmr.msra.gmra.mrb[6].mxu1 %v719_v35 }
 0x8e0   :  { %1512 = vmatprep.mubr.msk.f32.mxu1 %vm1810_vm0, %v1811_v4  ;;  %1713 = vmatpush3.bf16.msra.mxu1 %v1712_v55 }
 0x8e1   :  { %1714 = vmatprep.subr.bf16.mxu1 %v1809_v0 }
 0x8e4   :  { %1716 = vmatpush3.bf16.msra.mxu1 %v1715_v61 }
 0x8e5   :  { %1717 = vmatprep.subr.bf16.mxu1 %v1809_v0 }
 0x8e8   :  { %1719 = vmatpush3.bf16.msra.mxu1 %v1718_v3 }
 0x8e9   :  { %1720 = vmatprep.subr.bf16.mxu1 %v1809_v0 }
 0x8ec   :  { %1722 = vmatpush3.bf16.msra.mxu1 %v1721_v9 }
 0x8ed   :  { %1723 = vmatprep.subr.bf16.mxu1 %v1809_v0 }
 0x8f0   :  { %1725 = vmatpush3.bf16.msra.mxu1 %v1724_v16 }
 0x8f1   :  { %1726 = vmatprep.subr.bf16.mxu1 %v1809_v0 }
 0x8f4   :  { %1728 = vmatpush3.bf16.msra.mxu1 %v1727_v19 }
 0x8f5   :  { %1729 = vmatprep.subr.bf16.mxu1 %v1809_v0 }
 0x8f8   :  { %1731 = vmatpush3.bf16.msra.mxu1 %v1730_v23 }
 0x8f9   :  { %1732 = vmatprep.subr.bf16.mxu1 %v1809_v0 }
 0x8fc   :  { %1734 = vmatpush3.bf16.msra.mxu1 %v1733_v18 }
 0x9b2   :  { %v786_v37 = vpop.f32.mrb[6].mxu1 }
 0x9b3   :  { %v790_v38 = vadd.f32 %v786_v37, %v162_v36  ;;  %v1444_v39 = vpop.f32.mrb[7].mxu1 }
 0x9b5   :  { %v1017_v40 = vmul.f32 -1.442695, %v790_v38  ;;  %1789 = vtanh.f32 %v790_v38 }
 0x9b7   :  { %1791 = vpow2.f32 %v1017_v40 }
 0x9bf   :  { %v1790_v41 = vpop.eup %1789 }
 0x9c0   :  { %800 = vrot.lane.b32.xlu1 %v1790_v41, %s1814_s25 }
 0x9c1   :  { %v1792_v42 = vpop.eup %1791 }
 0x9c2   :  { %v794_v43 = vadd.f32 1.0, %v1792_v42 }
 0x9c4   :  { %1793 = vrcp.f32 %v794_v43 }
 0x9ce   :  { %v1794_v44 = vpop.eup %1793 }
 0x9cf   :  { %798 = vrot.lane.b32.xlu0 %v1794_v44, %s1813_s22 }
 0x9d3   :  { %802 = vrot.lane.b32.xlu0 %v1794_v44, %s1812_s21 }
 0xa32   :  { %v801_v4 = vpop.permute.xlu1 %800 }
 0xa33   :  { %v805_v62 = vmul.f32 %v1794_v44, %v801_v4 }
 0xa41   :  { %v799_v45 = vpop.permute.xlu0 %798 }
 0xa42   :  { %v804_v46 = vmul.f32 %v799_v45, %v717_v31 }
 0xa44   :  { %v2150_v47 = vadd.f32 %v805_v62, %v804_v46 }
 0xa45   :  { %v803_v49 = vpop.permute.xlu0 %802 }
 0xa46   :  { %1795 = vtanh.f32 %v2150_v47 }
 0xa50   :  { %v1796_v48 = vpop.eup %1795 }
 0xa51   :  { %v808_v50 = vmul.f32 %v1796_v48, %v803_v49 }
 0xa53   :  { %1478 = vmatmul.mubr.f32.vlgmr.msra.gmra.mrb[14].mxu0 %v808_v50 }
 0xb26   :  { %v875_v54 = vpop.f32.mrb[14].mxu0 }
 0xb27   :  { %v879_v56 = vadd.f32 %v875_v54, %v167_v51  ;;  %v1479_v57 = vpop.f32.mrb[15].mxu0 }
 0xb29   :  { %v1018_v63 = vmul.f32 -1.442695, %v879_v56  ;;  %1797 = vtanh.f32 %v879_v56 }
 0xb2b   :  { %1799 = vpow2.f32 %v1018_v63 }
 0xb33   :  { %v1798_v10 = vpop.eup %1797 }
 0xb34   :  { %889 = vrot.lane.b32.xlu0 %v1798_v10, %s1814_s25 }
 0xb35   :  { %v1800_v11 = vpop.eup %1799 }
 0xb36   :  { %v883_v15 = vadd.f32 1.0, %v1800_v11 }
 0xb38   :  { %1801 = vrcp.f32 %v883_v15 }
 0xb42   :  { %v1802_v14 = vpop.eup %1801 }
 0xb43   :  { %887 = vrot.lane.b32.xlu1 %v1802_v14, %s1813_s22 }
 0xb47   :  { %891 = vrot.lane.b32.xlu1 %v1802_v14, %s1812_s21 }
 0xba6   :  { %v890_v25 = vpop.permute.xlu0 %889 }
 0xba7   :  { %v894_v24 = vmul.f32 %v1802_v14, %v890_v25 }
 0xbb5   :  { %v888_v21 = vpop.permute.xlu1 %887 }
 0xbb6   :  { %v893_v0 = vmul.f32 %v888_v21, %v2150_v47 }
 0xbb8   :  { %v895_v26 = vadd.f32 %v894_v24, %v893_v0 }
 0xbb9   :  { %v892_v30 = vpop.permute.xlu1 %891 }
 0xbba   :  { %1803 = vtanh.f32 %v895_v26 }
 0xbc4   :  { %v1804_v27 = vpop.eup %1803 }
 0xbc5   :  { %v897_v28 = vmul.f32 %v1804_v27, %v892_v30 }
 0xbc7   :  { %1513 = vmatmul.mubr.f32.vlgmr.msra.gmra.mrb[8].mxu1 %v897_v28 }
 0xc9a   :  { %v987_v29 = vpop.f32.mrb[8].mxu1 }
 0xc9b   :  { %v988_v31 = vadd.f32 %v1019_v59, %v987_v29  ;;  %v1514_v32 = vpop.f32.mrb[9].mxu1 }
 0xc9d   :  { %v1020_v34 = vmul.f32 -1.442695, %v988_v31 }
 0xc9f   :  { %1805 = vpow2.f32 %v1020_v34 }
 0xca9   :  { %v1806_v35 = vpop.eup %1805 }
 0xcaa   :  { %v994_v36 = vadd.f32 1.0, %v1806_v35 }
 0xcac   :  { %1807 = vrcp.f32 %v994_v36 }
 0xcb6   :  { %v1808_v37 = vpop.eup %1807 }
 0xcb7   :  { %997 = vst [vmem:[%s2226_s6] sm:$0xff] %v1808_v37 }

</bundles_post_ra>
